<compile_context>
chip_gen: v6e
topology: v6e:2x2x1
jax: 0.10.0
libtpu: 0.0.40
codegen_flags: <defaults>
</compile_context>

<pallas_src>
import math

import jax
import jax.numpy as jnp
from jax.experimental import pallas as pl
from jax.experimental.pallas import tpu as pltpu


def _transpose_kernel(x_ref, o_ref):
    # x_ref block: (Ts, Th) in VMEM; o_ref block: (Th, Ts).
    # Batch dim is squeezed out -> clean 2-D XLU transpose.
    o_ref[...] = x_ref[...].T


def _default_max_tile(dtype):
    """Dtype/generation-scaled tile edge (elements); always a multiple of 128.

    Double-buffered in+out footprint is 4 * tile^2 * itemsize:
      v5e / unknown : f32 512 (4 MiB), bf16 1024 (8 MiB), int8 1024 (4 MiB)
      v6e / v7x     : f32 1024 (16 MiB), bf16 1024 (8 MiB), int8 2048 (16 MiB)
    All fit the respective scoped-VMEM defaults (16 MiB v5e, 32 MiB v6e/v7x)
    without touching vmem_limit_bytes.
    """
    itemsize = jnp.dtype(dtype).itemsize
    kind = ""
    try:
        kind = jax.devices()[0].device_kind.lower()
    except Exception:  # pragma: no cover - defensive; default stays conservative
        pass
    roomy_vmem = ("v6" in kind) or ("v7" in kind)
    if itemsize >= 4:
        return 1024 if roomy_vmem else 512
    if itemsize == 2:
        return 1024
    return 2048 if roomy_vmem else 1024


def _pick_tile(n, max_tile):
    """Tile edge for an axis of extent n.

    Returns either the full extent (no masking, exempt from the (8,128) rule)
    or `max_tile` (a 128-multiple); in the latter case the cdiv grid's
    boundary block is masked by Pallas.
    """
    return n if n <= max_tile else max_tile


def _transpose_last_two(x3, max_tile):
    """Swap the last two axes of a 3-D array (B, S, H) -> (B, H, S)."""
    B, S, H = x3.shape
    dtype = x3.dtype
    itemsize = jnp.dtype(dtype).itemsize

    Ts = _pick_tile(S, max_tile)
    Th = _pick_tile(H, max_tile)
    n_s = pl.cdiv(S, Ts)
    n_h = pl.cdiv(H, Th)

    # h outer, s inner: successive grid steps write sequential output blocks
    # along the (B, H, S) result's last axis.
    grid = (B, n_h, n_s)

    return pl.pallas_call(
        _transpose_kernel,
        out_shape=jax.ShapeDtypeStruct((B, H, S), dtype),
        grid=grid,
        in_specs=[
            pl.BlockSpec((pl.Squeezed(), Ts, Th), lambda b, h, s: (b, s, h)),
        ],
        out_specs=pl.BlockSpec((pl.Squeezed(), Th, Ts), lambda b, h, s: (b, h, s)),
        compiler_params=pltpu.CompilerParams(
            dimension_semantics=("parallel", "parallel", "parallel"),
        ),
        cost_estimate=pl.CostEstimate(
            flops=0,
            transcendentals=0,
            bytes_accessed=2 * B * S * H * itemsize,  # real traffic, no padding
        ),
    )(x3)


def transpose_layer(x, dim0, dim1, max_tile=None):
    """Pallas implementation of torch.Tensor.transpose(dim0, dim1).

    The last-two-axis swap (any rank >= 2, leading dims flattened into a batch
    axis) runs through the Pallas kernel; other axis pairs fall back to
    jnp.swapaxes.
    """
    nd = x.ndim
    d0, d1 = dim0 % nd, dim1 % nd
    if d0 == d1:
        return x
    lo, hi = (d0, d1) if d0 < d1 else (d1, d0)
    if not (lo == nd - 2 and hi == nd - 1):
        # TODO(synk): non-trailing axis swaps are best folded into the
        # consumer's layout (dot_general dims / BlockSpec index_map) rather
        # than a dedicated data-movement kernel; fall back to keep semantics.
        return jnp.swapaxes(x, d0, d1)

    if max_tile is None:
        max_tile = _default_max_tile(x.dtype)
    assert max_tile % 128 == 0, "max_tile must be a multiple of 128"

    lead = x.shape[:-2]
    S, H = x.shape[-2], x.shape[-1]
    B = math.prod(lead) if lead else 1

    x3 = x.reshape((B, S, H))          # metadata-only collapse of leading dims
    out3 = _transpose_last_two(x3, max_tile)
    return out3.reshape(lead + (H, S))


if __name__ == "__main__":
    key = jax.random.PRNGKey(0)
    k1, k2, k3 = jax.random.split(key, 3)

    # Primary case: (batch, seq, hidden) shapes implied by the module.
    B, S, H = 2, 8, 32
    x = jax.random.normal(k1, (B, S, H), dtype=jnp.float32)
    y = jax.block_until_ready(transpose_layer(x, 1, 2))
    ref = jnp.swapaxes(x, 1, 2)
    assert y.shape == (B, H, S), y.shape
    assert jnp.array_equal(y, ref), "mismatch vs reference transpose (f32)"

    # Ragged, non-128-aligned dims + bf16: single full-extent block per batch
    # element, no pad/slice passes.
    x2 = jax.random.normal(k2, (2, 200, 144), dtype=jnp.bfloat16)
    y2 = jax.block_until_ready(transpose_layer(x2, 1, 2))
    assert y2.shape == (2, 144, 200), y2.shape
    assert jnp.array_equal(y2, jnp.swapaxes(x2, 1, 2)), "mismatch (bf16 ragged)"

    # Force the tiled cdiv path with masked boundary blocks on both axes.
    x3 = jax.random.normal(k3, (2, 200, 176), dtype=jnp.float32)
    y3 = jax.block_until_ready(transpose_layer(x3, 1, 2, max_tile=128))
    assert y3.shape == (2, 176, 200), y3.shape
    assert jnp.array_equal(y3, jnp.swapaxes(x3, 1, 2)), "mismatch (masked edge tiles)"

    print("KERNEL_OK")
</pallas_src>

<mosaic_0001>
module attributes {stable_mosaic.version = 11 : i64} {
  func.func @_transpose_kernel(%arg0: i32, %arg1: i32, %arg2: i32, %arg3: memref<1x8x32xf32, #tpu.memory_space<vmem>>, %arg4: memref<1x32x8xf32, #tpu.memory_space<vmem>>) attributes {dimension_semantics = [#tpu.dimension_semantics<parallel>, #tpu.dimension_semantics<parallel>, #tpu.dimension_semantics<parallel>], iteration_bounds = array<i64: 2, 1, 1>, scalar_prefetch = 0 : i64, scratch_operands = 0 : i64, tpu.core_type = #tpu.core_type<tc>, window_params = [{transform_indices = @transform_0, window_bounds = array<i64: 1, 8, 32>}, {transform_indices = @transform_1, window_bounds = array<i64: 1, 32, 8>}]} {
    %c0 = arith.constant 0 : index
    %c0_0 = arith.constant 0 : index
    %c0_1 = arith.constant 0 : index
    %0 = vector.load %arg3[%c0, %c0_0, %c0_1] : memref<1x8x32xf32, #tpu.memory_space<vmem>>, vector<1x8x32xf32>
    %1 = vector.shape_cast %0 : vector<1x8x32xf32> to vector<8x32xf32>
    %2 = tpu.transpose %1, [1, 0] : vector<8x32xf32> -> vector<32x8xf32>
    %c0_2 = arith.constant 0 : index
    %c0_3 = arith.constant 0 : index
    %c0_4 = arith.constant 0 : index
    %3 = vector.load %arg4[%c0_2, %c0_3, %c0_4] : memref<1x32x8xf32, #tpu.memory_space<vmem>>, vector<1x32x8xf32>
    %4 = vector.shape_cast %3 : vector<1x32x8xf32> to vector<32x8xf32>
    %5 = vector.shape_cast %2 : vector<32x8xf32> to vector<1x32x8xf32>
    tpu.vector_store %arg4[%c0_2, %c0_3, %c0_4], %5 {strides = array<i32>} : memref<1x32x8xf32, #tpu.memory_space<vmem>>, vector<1x32x8xf32>,
    return
  }
  func.func @transform_0(%arg0: i32, %arg1: i32, %arg2: i32) -> (i32, i32, i32) {
    %c0_i32 = arith.constant 0 : i32
    return %arg0, %arg2, %arg1 : i32, i32, i32
  }
  func.func @transform_1(%arg0: i32, %arg1: i32, %arg2: i32) -> (i32, i32, i32) {
    %c0_i32 = arith.constant 0 : i32
    return %arg0, %arg1, %arg2 : i32, i32, i32
  }
}

</mosaic_0001>

<bundles_post_ra>
// kernel: tpu_custom_call.1
= control target key start
LH: loop header
LB: loop body
LE: loop exit
PB: predicated region body
PF: predicated region fallthrough
CT: control target
= control target key end

     0   :  { %6 = vsyncpa [#allocation3], 0  ;;  %s583_s0 = inlined_call_operand.hbm [shape: f32[2,8,32], index: 0, kind: input, shape index: {}]   ;;  %s584_s1 = inlined_call_operand.vmem [shape: f32[2,32,8], index: 1, kind: output, shape index: {}]  }
   0x1   :  { %8 = vsyncpa [#allocation3 + $0x1], 0  ;;  %s483_s6 = smov 0   ;;  %s485_s7 = smov 0  }
   0x2   :  { %s487_s8 = smov 0   ;;  %s489_s9 = smov 0  }
   0x3   :  { %s491_s10 = smov 0   ;;  %s493_s11 = smov 0  }
   0x4 LB: > { %s323_s12 = sadd.s32 4294967295, %s470_s11   ;;  %s33_s13 = sadd.s32 1, %s466_s10  ;;  %s470_s11 = sphi %s493_s11, %s14_s11   ;;  %s466_s10 = sphi %s491_s10, %s592_s10   ;;  %s462_s9 = sphi %s489_s9, %s591_s9   ;;  %s458_s8 = sphi %s487_s8, %s590_s8   ;;  %s454_s7 = sphi %s485_s7, %s589_s7   ;;  %s450_s6 = sphi %s483_s6, %s588_s6  }
   0x5   : > { %p35_p0 = scmp.ge.s32.totalorder %s33_s13, 2  ;;  %s44_s14 = sadd.s32 1, %s458_s8 }
   0x6   : > { %p51_p1 = scmp.ne.s32.totalorder %s458_s8, %s454_s7  ;;  %p52_p2 = scmp.eq.s32.totalorder %s470_s11, 0 }
   0x7   : > { %s594_s13 = smov (%p35_p0, %s33_s13), 0  ;;  %p57_p4 = scmp.ne.s32.totalorder %s454_s7, %s450_s6 }
   0x8   : > { %p519_p3 = por %p52_p2, %p51_p1  ;;  %s37_s16 = ssub.s32 %s466_s10, %s594_s13 }
   0x9   : > { %p58_p5 = scmp.eq.s32.totalorder %s323_s12, 0  ;;  %p42_p6 = scmp.eq.s32.totalorder %s37_s16, 0 }
   0xa   : > { %p342_p8 = scmp.lt.s32.totalorder %s470_s11, 2  ;;  %s111_s19 = sand.u32 1, %s458_s8  }
   0xb   : > { %p526_p7 = por %p58_p5, %p57_p4  ;;  %s328_s20 = sshll.u32 %s466_s10, 7 }
   0xc   : > { %s532_s18 = scalar_select %p42_p6, %s458_s8, %s44_s14  }
   0xd   : > { %s327_s21 = sshll.u32 %s111_s19, 3  ;;  %s122_s24 = scalar_lea.hbm %s583_s0, %s328_s20 }
   0xe   : > { %s115_s25 = scalar_lea.vmem [#allocation2], %s327_s21  ;;  %p541_p9 = pnand %p342_p8, %p519_p3 }
   0xf   : > { %s124_s26 = sshll.u32 %s115_s25, 4  ;;  %p329_p10 = scmp.ge.s32.totalorder %s470_s11, 1  ;;  %s125_s26 = int_to_ptr.vmem [resolvable:$true] %s124_s26 }
  0x10   : > { %p129_p11 = scmp.lt.s32.totalorder %s470_s11, 3  ;;  %s112_s28 = scalar_lea.sflag [#allocation3], %s111_s19 }
  0x11   : > { %p394_p12 = pneg %p541_p9  ;;  %s405_s29 = scalar_lea.vmem %s125_s26, 128 }
  0x12   : > { %p406_p13 = scmp.ne.s32.totalorder %s125_s26, %s405_s29  ;;  %s472_s30 = smov [#allocation2]  }
  0x13   : > { %s410_s2 = sshll.u32 %s472_s30, 4  ;;  %s411_s2 = int_to_ptr.vmem [resolvable:$false] %s410_s2 }
  0x14   : > { %p408_p0 = pnand %p406_p13, %p394_p12  ;;  %s412_s3 = scalar_lea.vmem %s411_s2, 256 }
  0x15   : > { %p413_p2 = scmp.lt.s32.totalorder %s125_s26, %s411_s2  ;;  %p414_p3 = scmp.lt.s32.totalorder %s412_s3, %s405_s29 }
  0x16   : > { %p409_p1 = pneg %p408_p0 }
  0x17   : > { %p415_p4 = por %p414_p3, %p413_p2 }
  0x19   : > { %p416_p5 = pnand %p415_p4, %p409_p1 }
  0x1b   : > { %419 = shalt.err (!%p416_p5)
}
  0x1c   : > { %341 = dma.hbm_to_vmem [thread:$0]  (!%p541_p9), %s122_s24, 128, %s125_s26, %s112_s28  }
  0x1d   : > { %p130_p6 = pnand %p329_p10, %p129_p11 }
  0x1e   : > { %s135_s4 = sand.u32 (!%p130_p6), 1, %s454_s7  }
  0x1f   : > { %133 = sbr.rel (%p130_p6) target bundleno = 176 (0xb0), region = 24  ;;  %s330_s5 = sshll.u32 (!%p130_p6), %s135_s4, 3 }
  0x20   : > { %s136_s6 = scalar_lea.sflag (!%p130_p6), [#allocation3], %s135_s4  ;;  %s139_s12 = scalar_lea.vmem (!%p130_p6), [#allocation2], %s330_s5 }
  0x24   : > { %445 = dma.done.wait (%p526_p7), %s136_s6, 128  }
  0x25   : > { %447 = vsyncadd (%p526_p7), %s136_s6, 4294967168  ;;  %v178_v0 = vld [vmem:[%s139_s12] sm:$0xff]  ;;  %p166_p8 = scmp.lt.s32.totalorder %s462_s9, 1  ;;  %vm211_vm0 = vcmask 64512  }
  0x26   : > { %179 = vxpose.xlu0.b32.start.end [1/1] (short) (narrow) %v178_v0, 32 }
  0x27   : > { %s596_s9 = smov (!%p166_p8, %s462_s9), 1 }
  0x28   : > { %s335_s14 = sshll.u32 %s596_s9, 5 }
  0x29   : > { %s176_s19 = scalar_lea.vmem %s584_s1, %s335_s14 }
  0xa2   : > { %v195_v1 = vpop.trf.xlu0 }
  0xa3   : > { %212 = vst.msk [vmem:[%s176_s19] sm:$0xff] %vm211_vm0, %v195_v1 }
  0xa6   : > { %v196_v2 = vpop.trf.xlu0 }
  0xa7   : > { %213 = vst.msk [vmem:[%s176_s19 + $0x8] sm:$0xff] %vm211_vm0, %v196_v2 }
  0xaa   : > { %v197_v3 = vpop.trf.xlu0 }
  0xab   : > { %214 = vst.msk [vmem:[%s176_s19 + $0x10] sm:$0xff] %vm211_vm0, %v197_v3 }
  0xae   : > { %v198_v4 = vpop.trf.xlu0 }
  0xaf   : > { %215 = vst.msk [vmem:[%s176_s19 + $0x18] sm:$0xff] %vm211_vm0, %v198_v4 }
  0xb0 PF: > { %s14_s11 = sadd.s32 1, %s470_s11   ;;  %s588_s6 = smov %s454_s7 }
  0xb1   : > { %p11_p7 = scmp.ge.s32.totalorder %s14_s11, 4   ;;  %s589_s7 = smov %s458_s8 }
  0xb2   : > { %s590_s8 = smov %s532_s18  ;;  %s591_s9 = smov %s466_s10 }
  0xb3   : > { %s592_s10 = smov %s594_s13  ;;  %13 = sbr.rel (!%p11_p7) target bundleno = 4 (0x4), region = 64 }
  0xb8   :  { %252 = vsyncpa [#allocation3], 1 }
  0xb9   :  { %254 = vsyncpa [#allocation3 + $0x1], 1 }

</bundles_post_ra>
